<compile_context>
chip_gen: v7x
topology: tpu7x:2x2x1
jax: 0.10.0
libtpu: 0.0.40
codegen_flags: <defaults>
</compile_context>

<pallas_src>
import jax
import jax.numpy as jnp
from jax.experimental import pallas as pl
from jax.experimental.pallas import tpu as pltpu

_NUM_PARAMS = 3  # tau, sigma, rho


def _relu_params_kernel(p_ref, o_ref):
    # Single VPU elementwise max over the whole (1, 3) tile.
    o_ref[...] = jnp.maximum(p_ref[...], 0.0)


# One input ref, one output ref; whole (1, 3) array resident in VMEM, no grid,
# no scratch.  CostEstimate marks the call as ~free for XLA's scheduler.
_relu_params = pl.pallas_call(
    _relu_params_kernel,
    out_shape=jax.ShapeDtypeStruct((1, _NUM_PARAMS), jnp.float32),
    in_specs=[pl.BlockSpec(memory_space=pltpu.VMEM)],
    out_specs=pl.BlockSpec(memory_space=pltpu.VMEM),
    cost_estimate=pl.CostEstimate(
        flops=_NUM_PARAMS, transcendentals=0, bytes_accessed=2 * 4 * _NUM_PARAMS
    ),
)


@jax.jit
def stepsize_arch_forward_packed(params_packed):
    """ReLU over the packed (1, 3) [tau, sigma, rho] parameter slab.

    Preferred entry point for an unrolled U-PD loop: thread the returned
    packed slab through iterations and unpack only where the scalars are
    consumed.
    """
    return _relu_params(params_packed)


@jax.jit
def stepsize_arch_forward(params_packed):
    """Pallas equivalent of stepsize_arch.forward().

    Returns (ReLU(tau), ReLU(sigma), ReLU(rho)), each of shape (1,), matching
    the PyTorch module's output signature.
    """
    out = _relu_params(params_packed)
    return out[0, 0:1], out[0, 1:2], out[0, 2:3]


def init_params():
    """Deterministic init matching nn.Parameter(torch.DoubleTensor([0.1])) x3.

    Parameters are stored packed as a single (1, 3) f32 buffer
    [tau, sigma, rho] so forward() needs no per-step packing.
    """
    return jnp.full((1, _NUM_PARAMS), 0.1, dtype=jnp.float32)


if __name__ == "__main__":
    # The module takes no forward inputs; parameters are its only state.
    # PRNGKey(0) is unused for values (init is the deterministic constant 0.1),
    # but constructed per the harness convention.
    _ = jax.random.PRNGKey(0)

    params = init_params()

    tau_o, sigma_o, rho_o = jax.block_until_ready(stepsize_arch_forward(params))

    # Reference check: ReLU of the constant parameters (pure jnp reference).
    ref = jnp.maximum(params, 0.0)
    assert tau_o.shape == (1,) and sigma_o.shape == (1,) and rho_o.shape == (1,)
    assert jnp.allclose(tau_o, ref[0, 0:1])
    assert jnp.allclose(sigma_o, ref[0, 1:2])
    assert jnp.allclose(rho_o, ref[0, 2:3])

    # Packed entry point check.
    packed_o = jax.block_until_ready(stepsize_arch_forward_packed(params))
    assert packed_o.shape == (1, _NUM_PARAMS)
    assert jnp.allclose(packed_o, ref)

    # Also check ReLU behavior on negative parameter values.
    neg_params = jnp.array([[-0.25, 0.1, -1.5]], dtype=jnp.float32)
    t2, s2, r2 = jax.block_until_ready(stepsize_arch_forward(neg_params))
    assert jnp.allclose(t2, jnp.zeros((1,), jnp.float32))
    assert jnp.allclose(s2, jnp.array([0.1], jnp.float32))
    assert jnp.allclose(r2, jnp.zeros((1,), jnp.float32))

    print("KERNEL_OK")
</pallas_src>

<mosaic_0001>
module attributes {stable_mosaic.version = 11 : i64} {
  func.func @_relu_params_kernel(%arg0: memref<1x3xf32, #tpu.memory_space<vmem>>, %arg1: memref<1x3xf32, #tpu.memory_space<vmem>>) attributes {dimension_semantics = [], scalar_prefetch = 0 : i64, scratch_operands = 0 : i64, tpu.core_type = #tpu.core_type<tc>} {
    %c0 = arith.constant 0 : index
    %c0_0 = arith.constant 0 : index
    %0 = vector.load %arg0[%c0, %c0_0] : memref<1x3xf32, #tpu.memory_space<vmem>>, vector<1x3xf32>
    %cst = arith.constant 0.000000e+00 : f32
    %1 = vector.broadcast %cst : f32 to vector<1x3xf32>
    %2 = arith.maximumf %0, %1 : vector<1x3xf32>
    %c0_1 = arith.constant 0 : index
    %c0_2 = arith.constant 0 : index
    %3 = vector.load %arg1[%c0_1, %c0_2] : memref<1x3xf32, #tpu.memory_space<vmem>>, vector<1x3xf32>
    tpu.vector_store %arg1[%c0_1, %c0_2], %2 {strides = array<i32>} : memref<1x3xf32, #tpu.memory_space<vmem>>, vector<1x3xf32>,
    return
  }
}

</mosaic_0001>

<bundles_post_ra>
// kernel: stepsize_arch_forward.1
= control target key start
LH: loop header
LB: loop body
LE: loop exit
PB: predicated region body
PF: predicated region fallthrough
CT: control target
= control target key end

     0   :  { %6 = vsyncpa [#allocation3], 0  ;;  %s54_s6 = smov [#allocation2]   ;;  %s80_s0 = inlined_call_operand.hbm [shape: f32[1,3], index: 0, kind: input, shape index: {}]   ;;  %s81_s1 = inlined_call_operand.vmem [shape: f32[1,3], index: 1, kind: output, shape index: {}]  }
   0x1   :  { %s13_s7 = sshll.u32 %s54_s6, 4  ;;  %s30_s10 = scalar_lea.hbm %s80_s0, 16  ;;  %s14_s7 = int_to_ptr.vmem [resolvable:$true] %s13_s7 }
   0x2   :  { %p31_p0 = scmp.ne.s32.totalorder %s80_s0, %s30_s10  ;;  %p34_p1 = scmp.lt.u32.totalorder %s30_s10, %s80_s0 }
   0x4   :  { %p36_p2 = pnand %p34_p1, %p31_p0 }
   0x6   :  { %39 = shalt.err (!%p36_p2)
}
   0x7   :  { %s40_s15 = scalar_lea.vmem %s14_s7, 16  ;;  %s44_s16 = scalar_lea.vmem %s14_s7, 32 }
   0x8   :  { %p41_p3 = scmp.ne.s32.totalorder %s14_s7, %s40_s15  ;;  %p45_p4 = scmp.lt.s32.totalorder %s14_s7, %s14_s7 }
   0x9   :  { %p46_p5 = scmp.lt.s32.totalorder %s44_s16, %s40_s15 }
   0xb   :  { %p47_p6 = por %p46_p5, %p45_p4 }
   0xd   :  { %p48_p7 = pnand %p47_p6, %p41_p3 }
   0xf   :  { %51 = shalt.err (!%p48_p7)
}
  0x10   :  { %16 = dma.hbm_to_vmem [thread:$0]  %s80_s0, 16, %s14_s7, [#allocation3]  }
  0x11   :  { %52 = dma.done.wait [#allocation3], 16  }
  0x12   :  { %53 = vsyncadd [#allocation3], 4294967280  ;;  %v20_v0 = vld [vmem:[#allocation2] sm:$0x1]  ;;  %vm22_vm0 = vcmask 16384  }
  0x13   :  { %v21_v1 = vmax.f32 %v20_v0, 0.0 }
  0x15   :  { %23 = vst.msk [vmem:[%s81_s1] sm:$0x1] %vm22_vm0, %v21_v1 }
  0x16   :  { %28 = vsyncpa [#allocation3], 1 }

</bundles_post_ra>
